<compile_context>
chip_gen: v7x
topology: tpu7x:2x2x1
jax: 0.10.0
libtpu: 0.0.40
codegen_flags: <defaults>
</compile_context>

<pallas_src>
import jax
import jax.numpy as jnp
import numpy as np
from jax import lax
from jax.experimental import pallas as pl
from jax.experimental.pallas import tpu as pltpu


def _round_up(x, m):
    return (x + m - 1) // m * m


def _make_kernel(*, num_quantiles, num_rows, tile_rows, ragged):
    Q = num_quantiles

    def kernel(p_ref, t_ref, r_ref, qv_ref, q0_ref, out_ref, cnt_ref):
        t = t_ref[...]                                   # (tile_rows, S*Q) f32
        p = p_ref[...]                                   # (tile_rows, S*Q) f32

        if ragged:
            # Zero rows past the real end of the array: the partial last-tile DMA
            # leaves garbage there and it must not reach the mask count / loss.
            row = lax.broadcasted_iota(jnp.int32, (tile_rows, 1), 0)
            valid = (pl.program_id(0) * tile_rows + row) < num_rows
            t = jnp.where(valid, t, 0.0)

        # ---- per-tile nonzero partials of the FULL target block (mean(mask)) ----
        # Sublane-aligned fold (tm,SQ) -> (tm//8, 8, SQ) is a free relayout; the
        # axis-0 sum is plain VPU vreg adds (no cross-lane XLU reduce, no
        # broadcast).  The final exact scalar sum happens in the wrapper.
        nz = (t != 0.0).astype(jnp.float32)
        cnt_ref[...] = jnp.sum(nz.reshape(tile_rows // 8, 8, -1), axis=0)

        # ---- broadcast target[..., 0] across each sensor's Q quantile lanes ----
        is_q0 = q0_ref[...] > 0.5                        # (1, S*Q) lane selector
        t0_only = jnp.where(is_q0, t, 0.0)               # value only on q==0 lanes
        t0 = t0_only
        for s in range(1, Q):                            # Q-1 XLU lane rotations
            t0 = t0 + pltpu.roll(t0_only, shift=s, axis=1)

        # ---- per-lane pinball loss, mask fused into a select ----
        qv = qv_ref[...]                                 # (1, S*Q) quantile per lane
        err = t0 - p
        pin = jnp.maximum((qv - 1.0) * err, qv * err)
        # mask==0 lanes (incl. the zeroed ragged tail, even with NaN/inf preds)
        # select exact 0.0; NaN clean kept after, mirroring the reference order.
        lane_loss = jnp.where(t0 != 0.0, pin, 0.0)
        lane_loss = jnp.where(jnp.isnan(lane_loss), 0.0, lane_loss)

        # ---- sum over each sensor group's Q lanes on the idle MXU -------------
        # Exact 3-pass LHS-only split: lane_loss == h1 + h2 + h3 bit-exactly and
        # `red` is 0/1 (exact in bf16), so three bf16 passes with f32
        # accumulation reproduce the full-f32 matmul at half of HIGHEST's cost.
        r = r_ref[...]                                   # (S*Q, S) bf16 0/1
        h1 = lane_loss.astype(jnp.bfloat16)
        res1 = lane_loss - h1.astype(jnp.float32)
        h2 = res1.astype(jnp.bfloat16)
        h3 = (res1 - h2.astype(jnp.float32)).astype(jnp.bfloat16)
        acc = jnp.dot(h1, r, preferred_element_type=jnp.float32)
        acc = acc + jnp.dot(h2, r, preferred_element_type=jnp.float32)
        acc = acc + jnp.dot(h3, r, preferred_element_type=jnp.float32)
        out_ref[...] = acc

    return kernel


def _const_block_spec(shape):
    """Constant-block-index operand: single-buffer it (never re-fetched)."""
    index_map = lambda i: (0,) * len(shape)
    try:
        return pl.BlockSpec(shape, index_map, pipeline_mode=pl.Buffered(1))
    except TypeError:  # older jax without pipeline_mode: fall back to default
        return pl.BlockSpec(shape, index_map)


def _device_kind():
    try:
        return jax.devices()[0].device_kind.lower()
    except Exception:
        return ""


def quantile_loss2(preds, target, quantiles, *, tile_m=1024):
    """preds, target: (batch, num_horizons, num_sensors, num_quantiles) float32.
    Returns the masked quantile (pinball) loss summed over quantiles,
    shape (batch, num_horizons, num_sensors) -- same as the PyTorch module."""
    B, H, S, Q = preds.shape
    assert target.shape == preds.shape
    assert len(quantiles) == Q
    M = B * H
    SQ = S * Q

    # natural-layout 2-D views: pure reshapes, no data movement
    preds2d = preds.reshape(M, SQ).astype(jnp.float32)
    target2d = target.reshape(M, SQ).astype(jnp.float32)

    # small lane-constant inputs (constant block index -> VMEM resident once)
    lane = np.arange(SQ)
    qvec = jnp.asarray(np.asarray(quantiles, np.float32)[lane % Q].reshape(1, SQ))
    is_q0 = jnp.asarray((lane % Q == 0).astype(np.float32).reshape(1, SQ))
    # 0/1 reduction matrix summing the Q lanes of each sensor group (exact in bf16).
    # NOTE: for very large num_sensors (S >~ 512) chunk this into 128/256-wide
    # column blocks with an extra grid axis instead of keeping (SQ,S) resident.
    red = jnp.asarray(
        ((lane[:, None] // Q) == np.arange(S)[None, :]).astype(np.float32)
    ).astype(jnp.bfloat16)

    # ---- per-generation VMEM budget -----------------------------------------
    kind = _device_kind()
    if "v7" in kind:            # 64 MiB physical VMEM per TensorCore
        vmem_limit = 44 * 2**20
    elif "v6" in kind:          # 128 MiB physical VMEM
        vmem_limit = 80 * 2**20
    else:                       # v5e / unknown: stay near the default scoped budget
        vmem_limit = 14 * 2**20

    # tile sizing: as many rows as fit the budget, leaving headroom for Mosaic's
    # internal scratch (large elementwise intermediates are VMEM-backed).
    budget = vmem_limit - 4 * 2**20
    resident = SQ * S * 2 + 2 * SQ * 4 + 2 * 8 * SQ * 4   # red(bf16,1x) + qvec/is_q0 + cnt
    per_row = (2 * 2 * SQ + 2 * S + 4 * SQ) * 4           # preds/target/out blocks + temps
    cap = max(8, (budget - resident) // per_row)
    tm = max(8, (min(tile_m, cap, _round_up(M, 8)) // 8) * 8)
    grid = pl.cdiv(M, tm)
    ragged = (M % tm) != 0

    # engage both v7x TensorCores; plain parallel elsewhere (1 TC per chip)
    dim_sem = ((pltpu.CORE_PARALLEL,) if ("v7" in kind and grid > 1)
               else (pltpu.PARALLEL,))

    kernel = _make_kernel(num_quantiles=Q, num_rows=M, tile_rows=tm,
                          ragged=ragged)

    out_unnorm, counts = pl.pallas_call(
        kernel,
        out_shape=(
            jax.ShapeDtypeStruct((M, S), jnp.float32),         # un-normalized loss
            jax.ShapeDtypeStruct((grid * 8, SQ), jnp.float32),  # per-tile count partials
        ),
        grid_spec=pltpu.PrefetchScalarGridSpec(
            num_scalar_prefetch=0,
            grid=(grid,),
            in_specs=[
                pl.BlockSpec((tm, SQ), lambda i: (i, 0)),   # preds  (natural layout)
                pl.BlockSpec((tm, SQ), lambda i: (i, 0)),   # target (natural layout)
                _const_block_spec((SQ, S)),                 # quantile-reduce matrix
                _const_block_spec((1, SQ)),                 # quantile value per lane
                _const_block_spec((1, SQ)),                 # q==0 lane selector
            ],
            out_specs=[
                pl.BlockSpec((tm, S), lambda i: (i, 0)),
                pl.BlockSpec((8, SQ), lambda i: (i, 0)),
            ],
        ),
        compiler_params=pltpu.CompilerParams(
            dimension_semantics=dim_sem,
            vmem_limit_bytes=int(vmem_limit)),
    )(preds2d, target2d, red, qvec, is_q0)

    # deferred normalization: torch.mean(mask) == count / numel, guarded for the
    # all-zero-target case (reference yields 0 there via its NaN cleaning).
    # Partial counts are small exact integers in f32 -> sum exactly in int32.
    total = jnp.sum(counts.astype(jnp.int32))
    total_f = total.astype(jnp.float32)
    numel = jnp.asarray(float(M * SQ), jnp.float32)
    norm = jnp.where(total > 0, numel / jnp.maximum(total_f, 1.0),
                     jnp.float32(0.0))
    return (out_unnorm * norm).reshape(B, H, S)


# ---------------- pure-JAX reference (mirrors the PyTorch forward) ----------------
def _reference(preds, target, quantiles):
    mask = (target != 0.0).astype(jnp.float32)
    mask = mask / jnp.mean(mask)
    mask = jnp.where(jnp.isnan(mask), jnp.zeros_like(mask), mask)
    total = jnp.zeros(target.shape[:-1], jnp.float32)
    for i, q in enumerate(quantiles):
        err = target[..., 0] - preds[..., i]
        loss = jnp.maximum((q - 1.0) * err, q * err)
        loss = loss * mask[..., 0]
        loss = jnp.where(jnp.isnan(loss), jnp.zeros_like(loss), loss)
        total = total + loss
    return total


if __name__ == "__main__":
    quantiles = [0.1, 0.5, 0.9]

    def run_case(shape, tile_m):
        B, H, S, Q = shape
        key = jax.random.PRNGKey(0)
        k1, k2, k3 = jax.random.split(key, 3)
        preds = jax.random.normal(k1, (B, H, S, Q), jnp.float32)
        target = jax.random.normal(k2, (B, H, S, Q), jnp.float32)
        # inject exact zeros so the (target != null_val) mask is non-trivial
        drop = jax.random.uniform(k3, (B, H, S, Q)) < 0.15
        target = jnp.where(drop, 0.0, target)

        out = quantile_loss2(preds, target, quantiles, tile_m=tile_m)
        out = jax.block_until_ready(out)
        ref = _reference(preds, target, quantiles)
        assert out.shape == (B, H, S)
        np.testing.assert_allclose(np.asarray(out), np.asarray(ref),
                                   rtol=1e-5, atol=1e-5)

    # single-tile case (tile auto-capped to the row count)
    run_case((2, 8, 128, 3), tile_m=1024)
    # multi-tile grid with a ragged last tile (exercises cdiv grid + row masking)
    run_case((3, 5, 128, 3), tile_m=8)
    print("KERNEL_OK")
</pallas_src>

<mosaic_0001>
module attributes {stable_mosaic.version = 11 : i64} {
  func.func @kernel(%arg0: i32, %arg1: memref<16x384xf32, #tpu.memory_space<vmem>>, %arg2: memref<16x384xf32, #tpu.memory_space<vmem>>, %arg3: memref<384x128xbf16, #tpu.memory_space<vmem>>, %arg4: memref<1x384xf32, #tpu.memory_space<vmem>>, %arg5: memref<1x384xf32, #tpu.memory_space<vmem>>, %arg6: memref<16x128xf32, #tpu.memory_space<vmem>>, %arg7: memref<8x384xf32, #tpu.memory_space<vmem>>) attributes {dimension_semantics = [#tpu.dimension_semantics<parallel>], iteration_bounds = array<i64: 1>, scalar_prefetch = 0 : i64, scratch_operands = 0 : i64, tpu.core_type = #tpu.core_type<tc>, window_params = [{transform_indices = @transform_0, window_bounds = array<i64: 16, 384>}, {transform_indices = @transform_1, window_bounds = array<i64: 16, 384>}, {pipeline_mode = #tpu.pipeline_mode<synchronous>, transform_indices = @transform_2, window_bounds = array<i64: 384, 128>}, {pipeline_mode = #tpu.pipeline_mode<synchronous>, transform_indices = @transform_3, window_bounds = array<i64: 1, 384>}, {pipeline_mode = #tpu.pipeline_mode<synchronous>, transform_indices = @transform_4, window_bounds = array<i64: 1, 384>}, {transform_indices = @transform_5, window_bounds = array<i64: 16, 128>}, {transform_indices = @transform_6, window_bounds = array<i64: 8, 384>}]} {
    %c0 = arith.constant 0 : index
    %c0_0 = arith.constant 0 : index
    %0 = vector.load %arg2[%c0, %c0_0] : memref<16x384xf32, #tpu.memory_space<vmem>>, vector<16x384xf32>
    %c0_1 = arith.constant 0 : index
    %c0_2 = arith.constant 0 : index
    %1 = vector.load %arg1[%c0_1, %c0_2] : memref<16x384xf32, #tpu.memory_space<vmem>>, vector<16x384xf32>
    %cst = arith.constant 0.000000e+00 : f32
    %2 = vector.broadcast %cst : f32 to vector<16x384xf32>
    %3 = arith.cmpf one, %0, %2 : vector<16x384xf32>
    %4 = arith.extui %3 : vector<16x384xi1> to vector<16x384xi32>
    %5 = arith.sitofp %4 : vector<16x384xi32> to vector<16x384xf32>
    %6 = vector.shape_cast %5 : vector<16x384xf32> to vector<2x8x384xf32>
    %cst_3 = arith.constant dense<0.000000e+00> : vector<8x384xf32>
    %7 = vector.multi_reduction <add>, %6, %cst_3 [0] : vector<2x8x384xf32> to vector<8x384xf32>
    %c0_4 = arith.constant 0 : index
    %c0_5 = arith.constant 0 : index
    %8 = vector.load %arg7[%c0_4, %c0_5] : memref<8x384xf32, #tpu.memory_space<vmem>>, vector<8x384xf32>
    tpu.vector_store %arg7[%c0_4, %c0_5], %7 {strides = array<i32>} : memref<8x384xf32, #tpu.memory_space<vmem>>, vector<8x384xf32>,
    %c0_6 = arith.constant 0 : index
    %c0_7 = arith.constant 0 : index
    %9 = vector.load %arg5[%c0_6, %c0_7] : memref<1x384xf32, #tpu.memory_space<vmem>>, vector<1x384xf32>
    %cst_8 = arith.constant 5.000000e-01 : f32
    %10 = vector.broadcast %cst_8 : f32 to vector<1x384xf32>
    %11 = arith.cmpf ogt, %9, %10 : vector<1x384xf32>
    %cst_9 = arith.constant 0.000000e+00 : f32
    %12 = vector.shape_cast %11 : vector<1x384xi1> to vector<1x384xi1>
    %13 = vector.broadcast %12 : vector<1x384xi1> to vector<16x384xi1>
    %14 = vector.broadcast %cst_9 : f32 to vector<16x384xf32>
    %15 = arith.select %13, %0, %14 : vector<16x384xi1>, vector<16x384xf32>
    %c1_i32 = arith.constant 1 : i32
    %16 = tpu.dynamic_rotate %15 by %c1_i32 dim 1 : vector<16x384xf32>, i32 -> vector<16x384xf32>
    %17 = arith.addf %15, %16 : vector<16x384xf32>
    %c2_i32 = arith.constant 2 : i32
    %18 = tpu.dynamic_rotate %15 by %c2_i32 dim 1 : vector<16x384xf32>, i32 -> vector<16x384xf32>
    %19 = arith.addf %17, %18 : vector<16x384xf32>
    %c0_10 = arith.constant 0 : index
    %c0_11 = arith.constant 0 : index
    %20 = vector.load %arg4[%c0_10, %c0_11] : memref<1x384xf32, #tpu.memory_space<vmem>>, vector<1x384xf32>
    %21 = arith.subf %19, %1 : vector<16x384xf32>
    %cst_12 = arith.constant 1.000000e+00 : f32
    %22 = vector.broadcast %cst_12 : f32 to vector<1x384xf32>
    %23 = arith.subf %20, %22 : vector<1x384xf32>
    %24 = vector.broadcast %23 : vector<1x384xf32> to vector<16x384xf32>
    %25 = arith.mulf %24, %21 : vector<16x384xf32>
    %26 = vector.broadcast %20 : vector<1x384xf32> to vector<16x384xf32>
    %27 = arith.mulf %26, %21 : vector<16x384xf32>
    %28 = arith.maximumf %25, %27 : vector<16x384xf32>
    %cst_13 = arith.constant 0.000000e+00 : f32
    %29 = vector.broadcast %cst_13 : f32 to vector<16x384xf32>
    %30 = arith.cmpf one, %19, %29 : vector<16x384xf32>
    %cst_14 = arith.constant 0.000000e+00 : f32
    %31 = vector.broadcast %cst_14 : f32 to vector<16x384xf32>
    %32 = arith.select %30, %28, %31 : vector<16x384xi1>, vector<16x384xf32>
    %33 = arith.cmpf one, %32, %32 : vector<16x384xf32>
    %cst_15 = arith.constant 0.000000e+00 : f32
    %34 = vector.broadcast %cst_15 : f32 to vector<16x384xf32>
    %35 = arith.select %33, %34, %32 : vector<16x384xi1>, vector<16x384xf32>
    %c0_16 = arith.constant 0 : index
    %c0_17 = arith.constant 0 : index
    %36 = vector.load %arg3[%c0_16, %c0_17] : memref<384x128xbf16, #tpu.memory_space<vmem>>, vector<384x128xbf16>
    %37 = arith.truncf %35 : vector<16x384xf32> to vector<16x384xbf16>
    %38 = arith.extf %37 : vector<16x384xbf16> to vector<16x384xf32>
    %39 = arith.subf %35, %38 : vector<16x384xf32>
    %40 = arith.truncf %39 : vector<16x384xf32> to vector<16x384xbf16>
    %41 = arith.extf %40 : vector<16x384xbf16> to vector<16x384xf32>
    %42 = arith.subf %39, %41 : vector<16x384xf32>
    %43 = arith.truncf %42 : vector<16x384xf32> to vector<16x384xbf16>
    %cst_18 = arith.constant dense<0.000000e+00> : vector<16x128xf32>
    %44 = tpu.matmul %37, %36, %cst_18 {dimension_numbers = #tpu.dot_dimension_numbers<[1], [0], [0], [1], [0, 0, 1, 1], [], []>} : vector<16x384xbf16>, vector<384x128xbf16>, vector<16x128xf32> -> vector<16x128xf32>
    %cst_19 = arith.constant dense<0.000000e+00> : vector<16x128xf32>
    %45 = tpu.matmul %40, %36, %cst_19 {dimension_numbers = #tpu.dot_dimension_numbers<[1], [0], [0], [1], [0, 0, 1, 1], [], []>} : vector<16x384xbf16>, vector<384x128xbf16>, vector<16x128xf32> -> vector<16x128xf32>
    %46 = arith.addf %44, %45 : vector<16x128xf32>
    %cst_20 = arith.constant dense<0.000000e+00> : vector<16x128xf32>
    %47 = tpu.matmul %43, %36, %cst_20 {dimension_numbers = #tpu.dot_dimension_numbers<[1], [0], [0], [1], [0, 0, 1, 1], [], []>} : vector<16x384xbf16>, vector<384x128xbf16>, vector<16x128xf32> -> vector<16x128xf32>
    %48 = arith.addf %46, %47 : vector<16x128xf32>
    %c0_21 = arith.constant 0 : index
    %c0_22 = arith.constant 0 : index
    %49 = vector.load %arg6[%c0_21, %c0_22] : memref<16x128xf32, #tpu.memory_space<vmem>>, vector<16x128xf32>
    tpu.vector_store %arg6[%c0_21, %c0_22], %48 {strides = array<i32>} : memref<16x128xf32, #tpu.memory_space<vmem>>, vector<16x128xf32>,
    return
  }
  func.func @transform_0(%arg0: i32) -> (i32, i32) {
    %c0_i32 = arith.constant 0 : i32
    %c0_i32_0 = arith.constant 0 : i32
    return %arg0, %c0_i32 : i32, i32
  }
  func.func @transform_1(%arg0: i32) -> (i32, i32) {
    %c0_i32 = arith.constant 0 : i32
    %c0_i32_0 = arith.constant 0 : i32
    return %arg0, %c0_i32 : i32, i32
  }
  func.func @transform_2(%arg0: i32) -> (i32, i32) {
    %c0_i32 = arith.constant 0 : i32
    %c0_i32_0 = arith.constant 0 : i32
    %c0_i32_1 = arith.constant 0 : i32
    return %c0_i32, %c0_i32_0 : i32, i32
  }
  func.func @transform_3(%arg0: i32) -> (i32, i32) {
    %c0_i32 = arith.constant 0 : i32
    %c0_i32_0 = arith.constant 0 : i32
    %c0_i32_1 = arith.constant 0 : i32
    return %c0_i32, %c0_i32_0 : i32, i32
  }
  func.func @transform_4(%arg0: i32) -> (i32, i32) {
    %c0_i32 = arith.constant 0 : i32
    %c0_i32_0 = arith.constant 0 : i32
    %c0_i32_1 = arith.constant 0 : i32
    return %c0_i32, %c0_i32_0 : i32, i32
  }
  func.func @transform_5(%arg0: i32) -> (i32, i32) {
    %c0_i32 = arith.constant 0 : i32
    %c0_i32_0 = arith.constant 0 : i32
    return %arg0, %c0_i32 : i32, i32
  }
  func.func @transform_6(%arg0: i32) -> (i32, i32) {
    %c0_i32 = arith.constant 0 : i32
    %c0_i32_0 = arith.constant 0 : i32
    return %arg0, %c0_i32 : i32, i32
  }
}

</mosaic_0001>

<bundles_post_ra>
// kernel: tpu_custom_call.1
= control target key start
LH: loop header
LB: loop body
LE: loop exit
PB: predicated region body
PF: predicated region fallthrough
CT: control target
= control target key end

     0   :  { %12 = vsyncpa [#allocation3], 0  ;;  %s1607_s0 = inlined_call_operand.hbm [shape: f32[16,384], index: 0, kind: input, shape index: {}]   ;;  %s1608_s1 = inlined_call_operand.hbm [shape: f32[16,384], index: 1, kind: input, shape index: {}]   ;;  %s1609_s2 = inlined_call_operand.hbm [shape: bf16[384,128], index: 2, kind: input, shape index: {}]   ;;  %s1610_s3 = inlined_call_operand.vmem [shape: f32[1,384], index: 3, kind: input, shape index: {}]   ;;  %s1611_s4 = inlined_call_operand.vmem [shape: f32[1,384], index: 4, kind: input, shape index: {}]   ;;  %s1612_s5 = inlined_call_operand.hbm [shape: f32[16,128], index: 5, kind: output, shape index: {0}]   ;;  %s1613_s6 = inlined_call_operand.hbm [shape: f32[8,384], index: 6, kind: output, shape index: {1}]  }
   0x1   :  { %13 = vsyncpa [#allocation6], 0 }
   0x2   :  { %14 = vsyncpa [#allocation4], 0 }
   0x3   :  { %15 = vsyncpa [#allocation10], 0  ;;  %s1138_s21 = smov [#allocation5]   ;;  %s1139_s23 = smov [#allocation2]  }
   0x4   :  { %s33_s22 = sshll.u32 %s1138_s21, 4  ;;  %s21_s24 = sshll.u32 %s1139_s23, 4  ;;  %s34_s22 = int_to_ptr.vmem [resolvable:$true] %s33_s22  ;;  %s1189_s24 = int_to_ptr.vmem [resolvable:$true] %s21_s24 }
   0x5   :  { %s1020_s27 = scalar_lea.hbm %s1608_s1, 768 }
   0x6   :  { %p1021_p0 = scmp.ne.s32.totalorder %s1608_s1, %s1020_s27  ;;  %p1024_p1 = scmp.lt.u32.totalorder %s1020_s27, %s1608_s1 }
   0x8   :  { %p1026_p2 = pnand %p1024_p1, %p1021_p0 }
   0xa   :  { %1029 = shalt.err (!%p1026_p2)
}
   0xb   :  { %s1030_s8 = scalar_lea.vmem %s34_s22, 768  ;;  %p1035_p4 = scmp.lt.s32.totalorder %s34_s22, %s34_s22 }
   0xc   :  { %p1031_p3 = scmp.ne.s32.totalorder %s34_s22, %s1030_s8  ;;  %p1036_p5 = scmp.lt.s32.totalorder %s1030_s8, %s1030_s8 }
   0xe   :  { %p1037_p6 = por %p1036_p5, %p1035_p4 }
  0x10   :  { %p1038_p7 = pnand %p1037_p6, %p1031_p3 }
  0x12   :  { %1041 = shalt.err (!%p1038_p7)
}
  0x13   :  { %s1140_s9 = smov 384   ;;  %s1141_s10 = smov 24  }
  0x14   :  { %39 = dma.hbm_to_vmem [thread:$0]  %s1608_s1, 768, %s34_s22, [#allocation6], %s1140_s9, %s1140_s9, %s1141_s10  }
  0x15   :  { %s1042_s15 = scalar_lea.hbm %s1607_s0, 768 }
  0x16   :  { %p1043_p8 = scmp.ne.s32.totalorder %s1607_s0, %s1042_s15  ;;  %p1046_p9 = scmp.lt.u32.totalorder %s1042_s15, %s1607_s0 }
  0x18   :  { %p1048_p10 = pnand %p1046_p9, %p1043_p8 }
  0x1a   :  { %1051 = shalt.err (!%p1048_p10)
}
  0x1b   :  { %s1052_s20 = scalar_lea.vmem %s1189_s24, 768  ;;  %p1057_p12 = scmp.lt.s32.totalorder %s1189_s24, %s1189_s24 }
  0x1c   :  { %p1053_p11 = scmp.ne.s32.totalorder %s1189_s24, %s1052_s20  ;;  %p1058_p13 = scmp.lt.s32.totalorder %s1052_s20, %s1052_s20 }
  0x1e   :  { %p1059_p0 = por %p1058_p13, %p1057_p12 }
  0x20   :  { %p1060_p1 = pnand %p1059_p0, %p1053_p11 }
  0x22   :  { %1063 = shalt.err (!%p1060_p1)
}
  0x23   :  { %27 = dma.hbm_to_vmem [thread:$0]  %s1607_s0, 768, %s1189_s24, [#allocation3], %s1140_s9, %s1140_s9, %s1141_s10  }
  0x24   :  { %s1142_s22 = smov [#allocation7]   ;;  %s1064_s27 = scalar_lea.hbm %s1609_s2, 3072 }
  0x25   :  { %s45_s23 = sshll.u32 %s1142_s22, 4  ;;  %p1065_p2 = scmp.ne.s32.totalorder %s1609_s2, %s1064_s27  ;;  %s46_s23 = int_to_ptr.vmem [resolvable:$true] %s45_s23 }
  0x26   :  { %p1068_p3 = scmp.lt.u32.totalorder %s1064_s27, %s1609_s2 }
  0x28   :  { %p1070_p4 = pnand %p1068_p3, %p1065_p2 }
  0x2a   :  { %1073 = shalt.err (!%p1070_p4)
}
  0x2b   :  { %s1074_s8 = scalar_lea.vmem %s46_s23, 3072  ;;  %p1079_p6 = scmp.lt.s32.totalorder %s46_s23, %s46_s23 }
  0x2c   :  { %p1075_p5 = scmp.ne.s32.totalorder %s46_s23, %s1074_s8  ;;  %p1080_p7 = scmp.lt.s32.totalorder %s1074_s8, %s1074_s8 }
  0x2e   :  { %p1081_p8 = por %p1080_p7, %p1079_p6 }
  0x30   :  { %p1082_p9 = pnand %p1081_p8, %p1075_p5 }
  0x32   :  { %1085 = shalt.err (!%p1082_p9)
}
  0x33   :  { %s1143_s0 = smov 64   ;;  %s1144_s24 = smov 4  }
  0x34   :  { %51 = dma.hbm_to_vmem [thread:$0]  %s1609_s2, 3072, %s46_s23, [#allocation6], %s1143_s0, %s1143_s0, %s1144_s24  }
  0x35   :  { %1130 = dma.done.wait [#allocation3], 768  }
  0x36   :  { %1131 = vsyncadd [#allocation3], 4294966528 }
  0x37   :  { %1132 = dma.done.wait [#allocation6], 3840  }
  0x38   :  { %1133 = vsyncadd [#allocation6], 4294963456  ;;  %v105_v0 = vlaneseq  ;;  %v1145_v1 = vmov 0.0   ;;  %v67_v5 = vld [vmem:[#allocation5 + $0x8] sm:$0xff]  ;;  %v102_v6 = vld [vmem:[%s1611_s4] sm:$0x7] }
  0x39   :  { %906 = vmatprep.subr.bf16.mxu1 %v1145_v1  ;;  %v66_v7 = vld [vmem:[#allocation5] sm:$0xff]  ;;  %vm103_vm0 = vcmp.gt.f32.partialorder %v102_v6, 0.5  ;;  %vm79_vm1 = vcmp.ne.f32.partialorder %v67_v5, 0.0  ;;  %v69_v10 = vld [vmem:[#allocation5 + $0x18] sm:$0xff]  ;;  %v1146_v11 = vmov 0   ;;  %v71_v15 = vld [vmem:[#allocation5 + $0x28] sm:$0xff] }
  0x3a   :  { %v106_v2 = vshrl.u32 %v105_v0, 7  ;;  %vm78_vm2 = vcmp.ne.f32.partialorder %v66_v7, 0.0  ;;  %v70_v9 = vld [vmem:[#allocation5 + $0x20] sm:$0xff]  ;;  %v104_v12 = vsel %vm103_vm0, 1, %v1146_v11  ;;  %v768_v13 = vsel %vm79_vm1, 1.0, %v1145_v1  ;;  %v1245_v16 = vld [vmem:[#allocation7 + $0x40] sm:$0xff]  }
  0x3b   :  { %v767_v14 = vsel %vm78_vm2, 1.0, %v1145_v1  ;;  %vm82_vm3 = vcmp.ne.f32.partialorder %v70_v9, 0.0  ;;  %vm81_vm4 = vcmp.ne.f32.partialorder %v69_v10, 0.0  ;;  %vm83_vm5 = vcmp.ne.f32.partialorder %v71_v15, 0.0  ;;  %813 = vmatprep.subr.bf16.mxu0 %v1245_v16  ;;  %v1257_v25 = vld [vmem:[#allocation7] sm:$0xff]   ;;  %s1147_s2 = smov 1  }
  0x3c   :  { %v1234_v3 = vsub.s32 1, %v106_v2  ;;  %v1236_v4 = vsub.s32 0, %v106_v2  ;;  %v1241_v8 = vsub.s32 2, %v106_v2  ;;  %v771_v19 = vsel %vm82_vm3, 1.0, %v1145_v1  ;;  %v68_v29 = vld [vmem:[#allocation5 + $0x10] sm:$0xff]  ;;  %v1274_v32 = vld [vmem:[#allocation7 + $0x48] sm:$0xff]   ;;  %814 = vmatpush3.bf16.msra.mxu0 %v1257_v25 }
  0x3d   :  { %v97_v20 = vadd.f32 %v771_v19, %v768_v13  ;;  %v770_v21 = vsel %vm81_vm4, 1.0, %v1145_v1  ;;  %v772_v28 = vsel %vm83_vm5, 1.0, %v1145_v1  ;;  %vm80_vm8 = vcmp.ne.f32.partialorder %v68_v29, 0.0  ;;  %v1272_v31 = vld [vmem:[#allocation7 + $0x80] sm:$0xff]   ;;  %v1282_v35 = vld [vmem:[#allocation7 + $0x8] sm:$0xff]   ;;  %815 = vmatprep.subr.bf16.mxu0 %v1274_v32  ;;  %v1293_v38 = vld [vmem:[#allocation7 + $0x50] sm:$0xff]  }
  0x3e   :  { %v112_v17 = vrot.slane %v104_v12, %v1234_v3  ;;  %v108_v18 = vrot.slane %v104_v12, %v1236_v4  ;;  %v116_v22 = vrot.slane %v104_v12, %v1241_v8  ;;  %v96_v24 = vadd.f32 %v770_v21, %v767_v14  ;;  %907 = vmatpush3.bf16.msra.mxu1 %v1272_v31  ;;  %v1287_v37 = vld [vmem:[#allocation7 + $0x88] sm:$0xff]   ;;  %v1302_v41 = vld [vmem:[#allocation7 + $0x10] sm:$0xff]   ;;  %v1311_v43 = vld [vmem:[#allocation7 + $0x58] sm:$0xff]   ;;  %s1148_s4 = smov 2  }
  0x3f   :  { %100 = vst [vmem:[#allocation9 + $0x8] sm:$0xff] %v97_v20  ;;  %v769_v34 = vsel %vm80_vm8, 1.0, %v1145_v1  ;;  %908 = vmatprep.subr.bf16.mxu1 %v1145_v1  ;;  %v1305_v42 = vld [vmem:[#allocation7 + $0x90] sm:$0xff]   ;;  %v1316_v44 = vld [vmem:[#allocation7 + $0x18] sm:$0xff]   ;;  %v1324_v46 = vld [vmem:[#allocation7 + $0x60] sm:$0xff]   ;;  %vm1149_vm10 = vmmov 0  }
  0x40   :  { %vm118_vm6 = vcmp.eq.s32.totalorder %v112_v17, 1  ;;  %vm1253_vm7 = vcmp.eq.s32.totalorder %v108_v18, 1  ;;  %99 = vst [vmem:[#allocation9] sm:$0xff] %v96_v24  ;;  %vm119_vm9 = vcmp.eq.s32.totalorder %v116_v22, 1  ;;  %v98_v36 = vadd.f32 %v772_v28, %v769_v34  ;;  %816 = vmatpush3.bf16.msra.mxu0 %v1282_v35  ;;  %v1319_v45 = vld [vmem:[#allocation7 + $0x98] sm:$0xff]   ;;  %v1327_v47 = vld [vmem:[#allocation7 + $0x20] sm:$0xff]   ;;  %922 = vmatprep.mubr.msk.bf16.mxu1 %vm1149_vm10, %v1145_v1 }
  0x41   :  { %v1259_v26 = vsel %vm118_vm6, %v67_v5, 0.0  ;;  %v1263_v27 = vsel %vm1253_vm7, %v66_v7, 0.0  ;;  %v1270_v30 = vsel %vm118_vm6, %v70_v9, 0.0  ;;  %v1278_v33 = vsel %vm1253_vm7, %v69_v10, 0.0  ;;  %817 = vmatprep.subr.bf16.mxu0 %v1293_v38  ;;  %v1329_v48 = vld [vmem:[#allocation7 + $0xa0] sm:$0xff]   ;;  %v1336_v49 = vld [vmem:[#allocation7 + $0x68] sm:$0xff]  }
  0x42   :  { %130 = vrot.lane.b32.xlu1 %v1259_v26, %s1147_s2  ;;  %126 = vrot.lane.b32.xlu0 %v1263_v27, %s1147_s2  ;;  %101 = vst [vmem:[#allocation9 + $0x10] sm:$0xff] %v98_v36  ;;  %v1295_v39 = vsel %vm119_vm9, %v71_v15, 0.0  ;;  %v1297_v40 = vsel %vm119_vm9, %v68_v29, 0.0  ;;  %v1339_v50 = vld [vmem:[#allocation7 + $0x28] sm:$0xff]   ;;  %v1345_v52 = vld [vmem:[#allocation7 + $0x70] sm:$0xff]   ;;  %v1356_v55 = vld [vmem:[#allocation7 + $0x78] sm:$0xff]  }
  0x43   :  { %909 = vmatpush3.bf16.msra.mxu1 %v1287_v37  ;;  %v1341_v51 = vld [vmem:[#allocation7 + $0xa8] sm:$0xff]   ;;  %v1349_v53 = vld [vmem:[#allocation7 + $0x30] sm:$0xff]   ;;  %v1360_v56 = vld [vmem:[#allocation7 + $0x38] sm:$0xff]   ;;  %v139_v62 = vand.u32 127, %v105_v0 }
  0x44   :  { %910 = vmatprep.subr.bf16.mxu1 %v1145_v1  ;;  %818 = vmatpush3.bf16.msra.mxu0 %v1302_v41  ;;  %v1352_v54 = vld [vmem:[#allocation7 + $0xb0] sm:$0xff]   ;;  %v1364_v57 = vld [vmem:[#allocation7 + $0xb8] sm:$0xff]   ;;  %v178_v5 = vld [vmem:[%s1610_s3] sm:$0x7]  ;;  %s1150_s3 = smov [#allocation9]  }
  0x45   :  { %819 = vmatprep.subr.bf16.mxu0 %v1311_v43  ;;  %vm140_vm11 = vcmp.lt.s32.totalorder %v139_v62, 1  ;;  %v773_v6 = vadd.f32 -1.0, %v178_v5  ;;  %vm165_vm12 = vcmp.lt.s32.totalorder %v139_v62, 2  ;;  %v216_v13 = vrot.slane %v178_v5, %v1234_v3  ;;  %v76_v22 = vld [vmem:[#allocation2 + $0x20] sm:$0xff]  ;;  %v73_v24 = vld [vmem:[#allocation2 + $0x8] sm:$0xff]  ;;  %s753_s15 = sshll.u32 %s1150_s3, 4  ;;  %s754_s15 = int_to_ptr.vmem [resolvable:$true] %s753_s15 }
  0x46   :  { %132 = vrot.lane.b32.xlu1 %v1270_v30, %s1147_s2  ;;  %128 = vrot.lane.b32.xlu0 %v1278_v33, %s1147_s2  ;;  %s1086_s16 = scalar_lea.vmem %s754_s15, 384  ;;  %p1091_p11 = scmp.lt.s32.totalorder %s754_s15, %s754_s15 }
  0x47   :  { %911 = vmatpush3.bf16.msra.mxu1 %v1305_v42  ;;  %v194_v12 = vrot.slane %v773_v6, %v1234_v3  ;;  %v190_v29 = vrot.slane %v773_v6, %v1236_v4  ;;  %p1087_p10 = scmp.ne.s32.totalorder %s754_s15, %s1086_s16  ;;  %p1092_p12 = scmp.lt.s32.totalorder %s1086_s16, %s1086_s16 }
  0x48   :  { %912 = vmatprep.subr.bf16.mxu1 %v1145_v1  ;;  %820 = vmatpush3.bf16.msra.mxu0 %v1316_v44 }
  0x49   :  { %821 = vmatprep.subr.bf16.mxu0 %v1324_v46  ;;  %p1093_p13 = por %p1092_p12, %p1091_p11 }
  0x4a   :  { %136 = vrot.lane.b32.xlu1 %v1295_v39, %s1147_s2  ;;  %134 = vrot.lane.b32.xlu0 %v1297_v40, %s1147_s2 }
  0x4b   :  { %913 = vmatpush3.bf16.msra.mxu1 %v1319_v45  ;;  %p1094_p0 = pnand %p1093_p13, %p1087_p10 }
  0x4c   :  { %914 = vmatprep.subr.bf16.mxu1 %v1145_v1  ;;  %822 = vmatpush3.bf16.msra.mxu0 %v1327_v47 }
  0x4d   :  { %823 = vmatprep.subr.bf16.mxu0 %v1336_v49 }
  0x4e   :  { %155 = vrot.lane.b32.xlu1 %v1278_v33, %s1148_s4  ;;  %153 = vrot.lane.b32.xlu0 %v1263_v27, %s1148_s4 }
  0x4f   :  { %915 = vmatpush3.bf16.msra.mxu1 %v1329_v48 }
  0x50   :  { %916 = vmatprep.subr.bf16.mxu1 %v1145_v1  ;;  %824 = vmatpush3.bf16.msra.mxu0 %v1339_v50 }
  0x51   :  { %825 = vmatprep.subr.bf16.mxu0 %v1345_v52 }
  0x52   :  { %159 = vrot.lane.b32.xlu1 %v1270_v30, %s1148_s4  ;;  %157 = vrot.lane.b32.xlu0 %v1259_v26, %s1148_s4 }
  0x53   :  { %917 = vmatpush3.bf16.msra.mxu1 %v1341_v51 }
  0x54   :  { %918 = vmatprep.subr.bf16.mxu1 %v1145_v1  ;;  %826 = vmatpush3.bf16.msra.mxu0 %v1349_v53 }
  0x55   :  { %827 = vmatprep.subr.bf16.mxu0 %v1356_v55 }
  0x56   :  { %163 = vrot.lane.b32.xlu1 %v1295_v39, %s1148_s4  ;;  %161 = vrot.lane.b32.xlu0 %v1297_v40, %s1148_s4 }
  0x57   :  { %919 = vmatpush3.bf16.msra.mxu1 %v1352_v54 }
  0x58   :  { %920 = vmatprep.subr.bf16.mxu1 %v1145_v1  ;;  %828 = vmatpush3.bf16.msra.mxu0 %v1360_v56 }
  0x59   :  { %844 = vmatprep.subr.bf16.mxu0 %v1245_v16 }
  0x5b   :  { %921 = vmatpush3.bf16.msra.mxu1 %v1364_v57 }
  0x5c   :  { %926 = vmatprep.subr.bf16.mxu1 %v1145_v1 }
  0xb4   :  { %v131_v58 = vpop.permute.xlu1 %130  ;;  %v127_v59 = vpop.permute.xlu0 %126 }
  0xb5   :  { %v143_v10 = vsel %vm140_vm11, %v127_v59, %v131_v58 }
  0xb6   :  { %v148_v0 = vadd.f32 %v143_v10, %v1259_v26 }
  0xb8   :  { %v133_v60 = vpop.permute.xlu1 %132  ;;  %v129_v61 = vpop.permute.xlu0 %128 }
  0xb9   :  { %v144_v11 = vsel %vm140_vm11, %v129_v61, %v133_v60 }
  0xba   :  { %v151_v14 = vadd.f32 %v144_v11, %v1270_v30  ;;  %v198_v30 = vrot.slane %v773_v6, %v1241_v8 }
  0xbc   :  { %v137_v63 = vpop.permute.xlu1 %136  ;;  %v135_v2 = vpop.permute.xlu0 %134 }
  0xbd   :  { %v142_v15 = vsel %vm140_vm11, %v133_v60, %v137_v63  ;;  %v146_v17 = vsel %vm140_vm11, %v137_v63, %v129_v61  ;;  %v141_v20 = vsel %vm140_vm11, %v131_v58, %v135_v2  ;;  %v145_v21 = vsel %vm140_vm11, %v135_v2, %v127_v59 }
  0xbe   :  { %v150_v34 = vadd.f32 %v146_v17, %v1278_v33  ;;  %v152_v36 = vadd.f32 %v142_v15, %v1295_v39  ;;  %v212_v58 = vrot.slane %v178_v5, %v1236_v4  ;;  %v220_v59 = vrot.slane %v178_v5, %v1241_v8  ;;  %v75_v5 = vld [vmem:[#allocation2 + $0x18] sm:$0xff] }
  0xbf   :  { %v147_v60 = vadd.f32 %v145_v21, %v1263_v27  ;;  %v149_v61 = vadd.f32 %v141_v20, %v1297_v40  ;;  %v77_v27 = vld [vmem:[#allocation2 + $0x28] sm:$0xff]  ;;  %v72_v20 = vld [vmem:[#allocation2] sm:$0xff]  ;;  %v74_v21 = vld [vmem:[#allocation2 + $0x10] sm:$0xff] }
  0xc0   :  { %v156_v7 = vpop.permute.xlu1 %155  ;;  %v154_v9 = vpop.permute.xlu0 %153 }
  0xc4   :  { %v160_v18 = vpop.permute.xlu1 %159  ;;  %v158_v19 = vpop.permute.xlu0 %157 }
  0xc5   :  { %v169_v23 = vsel %vm165_vm12, %v156_v7, %v160_v18  ;;  %v168_v3 = vsel %vm165_vm12, %v154_v9, %v158_v19 }
  0xc6   :  { %v176_v28 = vadd.f32 %v169_v23, %v151_v14  ;;  %v173_v26 = vadd.f32 %v168_v3, %v148_v0 }
  0xc8   :  { %v183_v63 = vsub.f32 %v176_v28, %v76_v22  ;;  %v180_v2 = vsub.f32 %v173_v26, %v73_v24  ;;  %v164_v10 = vpop.permute.xlu1 %163  ;;  %v162_v11 = vpop.permute.xlu0 %161  ;;  %vm240_vm13 = vcmp.ne.f32.partialorder %v176_v28, 0.0  ;;  %vm237_vm14 = vcmp.ne.f32.partialorder %v173_v26, 0.0 }
  0xc9   :  { %v167_v0 = vsel %vm165_vm12, %v160_v18, %v164_v10  ;;  %v171_v6 = vsel %vm165_vm12, %v164_v10, %v156_v7  ;;  %v166_v33 = vsel %vm165_vm12, %v158_v19, %v162_v11  ;;  %v170_v39 = vsel %vm165_vm12, %v162_v11, %v154_v9 }
  0xca   :  { %v206_v14 = vmul.f32 %v194_v12, %v183_v63  ;;  %v228_v4 = vmul.f32 %v216_v13, %v183_v63  ;;  %v203_v15 = vmul.f32 %v194_v12, %v180_v2  ;;  %v225_v8 = vmul.f32 %v216_v13, %v180_v2 }
  0xcb   :  { %v175_v17 = vadd.f32 %v171_v6, %v150_v34  ;;  %v177_v40 = vadd.f32 %v167_v0, %v152_v36  ;;  %v172_v22 = vadd.f32 %v170_v39, %v147_v60  ;;  %v174_v23 = vadd.f32 %v166_v33, %v149_v61 }
  0xcc   :  { %v234_v24 = vmax.f32 %v206_v14, %v228_v4  ;;  %v231_v18 = vmax.f32 %v203_v15, %v225_v8 }
  0xcd   :  { %v182_v7 = vsub.f32 %v175_v17, %v75_v5  ;;  %v184_v19 = vsub.f32 %v177_v40, %v77_v27  ;;  %vm239_vm15 = vcmp.ne.f32.partialorder %v175_v17, 0.0  ;;  %vm241_vm0 = vcmp.ne.f32.partialorder %v177_v40, 0.0 }
  0xce   :  { %v1401_v62 = vsel %vm240_vm13, %v234_v24, 0.0  ;;  %v1403_v9 = vsel %vm237_vm14, %v231_v18, 0.0  ;;  %v179_v12 = vsub.f32 %v172_v22, %v72_v20  ;;  %v181_v13 = vsub.f32 %v174_v23, %v74_v21 }
  0xcf   :  { %v205_v3 = vmul.f32 %v190_v29, %v182_v7  ;;  %v207_v34 = vmul.f32 %v198_v30, %v184_v19  ;;  %v227_v36 = vmul.f32 %v212_v58, %v182_v7  ;;  %v229_v63 = vmul.f32 %v220_v59, %v184_v19 }
  0xd0   :  { %v202_v60 = vmul.f32 %v190_v29, %v179_v12  ;;  %v204_v61 = vmul.f32 %v198_v30, %v181_v13  ;;  %v224_v2 = vmul.f32 %v212_v58, %v179_v12  ;;  %v226_v28 = vmul.f32 %v220_v59, %v181_v13 }
  0xd1   :  { %v233_v10 = vmax.f32 %v205_v3, %v227_v36  ;;  %v235_v26 = vmax.f32 %v207_v34, %v229_v63  ;;  %vm236_vm1 = vcmp.ne.f32.partialorder %v172_v22, 0.0  ;;  %vm238_vm2 = vcmp.ne.f32.partialorder %v174_v23, 0.0 }
  0xd2   :  { %v230_v11 = vmax.f32 %v202_v60, %v224_v2  ;;  %v232_v0 = vmax.f32 %v204_v61, %v226_v28  ;;  %vm249_vm3 = vcmp.ne.f32.partialorder %v1403_v9, %v1403_v9  ;;  %vm252_vm4 = vcmp.ne.f32.partialorder %v1401_v62, %v1401_v62 }
  0xd3   :  { %v1410_v6 = vsel %vm239_vm15, %v233_v10, 0.0  ;;  %v1413_v29 = vsel %vm241_vm0, %v235_v26, 0.0  ;;  %v255_v30 = vsel %vm249_vm3, 0.0, %v1403_v9  ;;  %v258_v58 = vsel %vm252_vm4, 0.0, %v1401_v62  ;;  %vm1417_vm5 = vmneg %vm252_vm4 }
  0xd4   :  { %v1421_v33 = vsel %vm236_vm1, %v230_v11, 0.0  ;;  %v1423_v39 = vsel %vm238_vm2, %v232_v0, 0.0  ;;  %v309_v14 = vpack.c.bf16 %v258_v58, %v255_v30  ;;  %vm251_vm6 = vcmp.ne.f32.partialorder %v1410_v6, %v1410_v6  ;;  %vm1427_vm7 = vmneg %vm249_vm3 }
  0xd5   :  { %v806_v15 = vpack.c.bf16 %v1410_v6, %v1421_v33  ;;  %v811_v8 = vpack.c.bf16 %v1413_v29, %v1423_v39  ;;  %vm248_vm8 = vcmp.ne.f32.partialorder %v1421_v33, %v1421_v33  ;;  %v257_v5 = vsel %vm251_vm6, 0.0, %v1410_v6  ;;  %vm800_vm9 = vmpackc.low %vm1417_vm5, %vm1427_vm7 }
  0xd6   :  { %v312_v27 = vunpack.c.l.bf16 %v309_v14  ;;  %v315_v17 = vunpack.c.h.bf16 %v309_v14  ;;  %v254_v40 = vsel %vm248_vm8, 0.0, %v1421_v33  ;;  %vm250_vm11 = vcmp.ne.f32.partialorder %v1423_v39, %v1423_v39  ;;  %vm1445_vm12 = vmneg %vm251_vm6 }
  0xd7   :  { %v308_v21 = vpack.c.bf16 %v257_v5, %v254_v40  ;;  %vm253_vm13 = vcmp.ne.f32.partialorder %v1413_v29, %v1413_v29  ;;  %v256_v22 = vsel %vm250_vm11, 0.0, %v1423_v39  ;;  %v801_v23 = vpack.c.bf16 %v1401_v62, %v1403_v9  ;;  %vm1457_vm14 = vmneg %vm248_vm8 }
  0xd8   :  { %v318_v18 = vsub.f32 %v255_v30, %v312_v27  ;;  %v321_v7 = vsub.f32 %v258_v58, %v315_v17  ;;  %v259_v19 = vsel %vm253_vm13, 0.0, %v1413_v29  ;;  %vm805_vm15 = vmpackc.low %vm1445_vm12, %vm1457_vm14 }
  0xd9   :  { %v311_v12 = vunpack.c.l.bf16 %v308_v21  ;;  %v314_v13 = vunpack.c.h.bf16 %v308_v21  ;;  %v310_v3 = vpack.c.bf16 %v259_v19, %v256_v22  ;;  %vm1466_vm0 = vmneg %vm253_vm13 }
  0xda   :  { %v324_v62 = vpack.c.bf16 %v321_v7, %v318_v18  ;;  %vm1473_vm1 = vmneg %vm250_vm11 }
  0xdb   :  { %v317_v36 = vsub.f32 %v254_v40, %v311_v12  ;;  %v320_v63 = vsub.f32 %v257_v5, %v314_v13  ;;  %v313_v60 = vunpack.c.l.bf16 %v310_v3  ;;  %v316_v61 = vunpack.c.h.bf16 %v310_v3  ;;  %vm810_vm2 = vmpackc.low %vm1466_vm0, %vm1473_vm1 }
  0xdc   :  { %517 = vmatprep.mubr.bf16.mxu0 %v324_v62  ;;  %v327_v2 = vunpack.c.l.bf16 %v324_v62  ;;  %v330_v28 = vunpack.c.h.bf16 %v324_v62 }
  0xdd   :  { %v323_v10 = vpack.c.bf16 %v320_v63, %v317_v36  ;;  %v319_v26 = vsub.f32 %v256_v22, %v313_v60  ;;  %v322_v11 = vsub.f32 %v259_v19, %v316_v61 }
  0xde   :  { %v333_v0 = vsub.f32 %v318_v18, %v327_v2  ;;  %v336_v30 = vsub.f32 %v321_v7, %v330_v28 }
  0xdf   :  { %v326_v58 = vunpack.c.l.bf16 %v323_v10  ;;  %v329_v14 = vunpack.c.h.bf16 %v323_v10  ;;  %518 = vmatmul.mubr.bf16.vlgmr.msra.gmra.mrb[0].mxu0 %v323_v10  ;;  %v325_v27 = vpack.c.bf16 %v322_v11, %v319_v26 }
  0xe0   :  { %845 = vmatpush3.bf16.msra.mxu0 %v1257_v25  ;;  %802 = vmatprep.mubr.msk.bf16.mxu0 %vm800_vm9, %v801_v23  ;;  %v339_v5 = vpack.c.bf16 %v336_v30, %v333_v0 }
  0xe1   :  { %v1487_v17 = vsub.f32 %v317_v36, %v326_v58  ;;  %v1489_v40 = vsub.f32 %v320_v63, %v329_v14  ;;  %v328_v21 = vunpack.c.l.bf16 %v325_v27  ;;  %v331_v22 = vunpack.c.h.bf16 %v325_v27  ;;  %923 = vmatmul.mubr.bf16.vlgmr.msra.gmra.mrb[0].mxu1 %v325_v27  ;;  %846 = vmatprep.subr.bf16.mxu0 %v1274_v32 }
  0xe2   :  { %927 = vmatpush3.bf16.msra.mxu1 %v1272_v31  ;;  %942 = vmatprep.mubr.msk.bf16.mxu1 %vm1149_vm10, %v1145_v1 }
  0xe3   :  { %v1495_v59 = vsub.f32 %v319_v26, %v328_v21  ;;  %v1497_v4 = vsub.f32 %v322_v11, %v331_v22  ;;  %928 = vmatprep.subr.bf16.mxu1 %v1145_v1  ;;  %v338_v23 = vpack.c.bf16 %v1489_v40, %v1487_v17 }
  0xe4   :  { %847 = vmatpush3.bf16.msra.mxu0 %v1282_v35 }
  0xe5   :  { %848 = vmatprep.subr.bf16.mxu0 %v1293_v38  ;;  %v340_v18 = vpack.c.bf16 %v1497_v4, %v1495_v59 }
  0xe6   :  { %929 = vmatpush3.bf16.msra.mxu1 %v1287_v37 }
  0xe7   :  { %930 = vmatprep.subr.bf16.mxu1 %v1145_v1 }
  0xe8   :  { %849 = vmatpush3.bf16.msra.mxu0 %v1302_v41 }
  0xe9   :  { %850 = vmatprep.subr.bf16.mxu0 %v1311_v43 }
  0xea   :  { %931 = vmatpush3.bf16.msra.mxu1 %v1305_v42 }
  0xeb   :  { %932 = vmatprep.subr.bf16.mxu1 %v1145_v1 }
  0xec   :  { %851 = vmatpush3.bf16.msra.mxu0 %v1316_v44 }
  0xed   :  { %852 = vmatprep.subr.bf16.mxu0 %v1324_v46 }
  0xee   :  { %933 = vmatpush3.bf16.msra.mxu1 %v1319_v45 }
  0xef   :  { %934 = vmatprep.subr.bf16.mxu1 %v1145_v1 }
  0xf0   :  { %853 = vmatpush3.bf16.msra.mxu0 %v1327_v47 }
  0xf1   :  { %854 = vmatprep.subr.bf16.mxu0 %v1336_v49 }
  0xf2   :  { %935 = vmatpush3.bf16.msra.mxu1 %v1329_v48 }
  0xf3   :  { %936 = vmatprep.subr.bf16.mxu1 %v1145_v1 }
  0xf4   :  { %855 = vmatpush3.bf16.msra.mxu0 %v1339_v50 }
  0xf5   :  { %856 = vmatprep.subr.bf16.mxu0 %v1345_v52 }
  0xf6   :  { %937 = vmatpush3.bf16.msra.mxu1 %v1341_v51 }
  0xf7   :  { %938 = vmatprep.subr.bf16.mxu1 %v1145_v1 }
  0xf8   :  { %857 = vmatpush3.bf16.msra.mxu0 %v1349_v53 }
  0xf9   :  { %858 = vmatprep.subr.bf16.mxu0 %v1356_v55 }
  0xfa   :  { %939 = vmatpush3.bf16.msra.mxu1 %v1352_v54 }
  0xfb   :  { %940 = vmatprep.subr.bf16.mxu1 %v1145_v1 }
  0xfc   :  { %859 = vmatpush3.bf16.msra.mxu0 %v1360_v56 }
  0xfd   :  { %875 = vmatprep.subr.bf16.mxu0 %v1245_v16 }
  0xfe   :  { %941 = vmatpush3.bf16.msra.mxu1 %v1364_v57 }
  0xff   :  { %807 = vmatmul.mubr.msk.bf16.vlgmr.msra.gmra.mrb[4].mxu0 %vm805_vm15, %v806_v15  ;;  %946 = vmatprep.subr.bf16.mxu1 %v1145_v1 }
 0x100   :  { %876 = vmatpush3.bf16.msra.mxu0 %v1257_v25  ;;  %681 = vmatprep.mubr.bf16.mxu0 %v339_v5 }
 0x101   :  { %943 = vmatmul.mubr.msk.bf16.vlgmr.msra.gmra.mrb[0].mxu1 %vm810_vm2, %v811_v8  ;;  %877 = vmatprep.subr.bf16.mxu0 %v1274_v32 }
 0x102   :  { %947 = vmatpush3.bf16.msra.mxu1 %v1272_v31  ;;  %962 = vmatprep.mubr.msk.bf16.mxu1 %vm1149_vm10, %v1145_v1 }
 0x103   :  { %948 = vmatprep.subr.bf16.mxu1 %v1145_v1 }
 0x104   :  { %878 = vmatpush3.bf16.msra.mxu0 %v1282_v35 }
 0x105   :  { %879 = vmatprep.subr.bf16.mxu0 %v1293_v38 }
 0x106   :  { %949 = vmatpush3.bf16.msra.mxu1 %v1287_v37 }
 0x107   :  { %950 = vmatprep.subr.bf16.mxu1 %v1145_v1 }
 0x108   :  { %880 = vmatpush3.bf16.msra.mxu0 %v1302_v41 }
 0x109   :  { %881 = vmatprep.subr.bf16.mxu0 %v1311_v43 }
 0x10a   :  { %951 = vmatpush3.bf16.msra.mxu1 %v1305_v42 }
 0x10b   :  { %952 = vmatprep.subr.bf16.mxu1 %v1145_v1 }
 0x10c   :  { %882 = vmatpush3.bf16.msra.mxu0 %v1316_v44 }
 0x10d   :  { %883 = vmatprep.subr.bf16.mxu0 %v1324_v46 }
 0x10e   :  { %953 = vmatpush3.bf16.msra.mxu1 %v1319_v45 }
 0x10f   :  { %954 = vmatprep.subr.bf16.mxu1 %v1145_v1 }
 0x110   :  { %884 = vmatpush3.bf16.msra.mxu0 %v1327_v47 }
 0x111   :  { %885 = vmatprep.subr.bf16.mxu0 %v1336_v49 }
 0x112   :  { %955 = vmatpush3.bf16.msra.mxu1 %v1329_v48 }
 0x113   :  { %956 = vmatprep.subr.bf16.mxu1 %v1145_v1 }
 0x114   :  { %886 = vmatpush3.bf16.msra.mxu0 %v1339_v50 }
 0x115   :  { %887 = vmatprep.subr.bf16.mxu0 %v1345_v52 }
 0x116   :  { %957 = vmatpush3.bf16.msra.mxu1 %v1341_v51 }
 0x117   :  { %958 = vmatprep.subr.bf16.mxu1 %v1145_v1 }
 0x118   :  { %888 = vmatpush3.bf16.msra.mxu0 %v1349_v53 }
 0x119   :  { %889 = vmatprep.subr.bf16.mxu0 %v1356_v55 }
 0x11a   :  { %959 = vmatpush3.bf16.msra.mxu1 %v1352_v54 }
 0x11b   :  { %960 = vmatprep.subr.bf16.mxu1 %v1145_v1 }
 0x11c   :  { %890 = vmatpush3.bf16.msra.mxu0 %v1360_v56 }
 0x11e   :  { %961 = vmatpush3.bf16.msra.mxu1 %v1364_v57 }
 0x11f   :  { %682 = vmatmul.mubr.bf16.vlgmr.msra.gmra.mrb[8].mxu0 %v338_v23 }
 0x121   :  { %963 = vmatmul.mubr.bf16.vlgmr.msra.gmra.mrb[0].mxu1 %v340_v18 }
 0x122   :  { %1097 = shalt.err (!%p1094_p0)
}
 0x123   :  { %s1098_s19 = scalar_lea.hbm %s1613_s6, 384 }
 0x124   :  { %p1099_p1 = scmp.ne.s32.totalorder %s1613_s6, %s1098_s19  ;;  %p1102_p2 = scmp.lt.u32.totalorder %s1098_s19, %s1613_s6 }
 0x126   :  { %p1104_p3 = pnand %p1102_p2, %p1099_p1 }
 0x128   :  { %1107 = shalt.err (!%p1104_p3)
}
 0x129   :  { %756 = dma.vmem_to_hbm [thread:$0]  %s754_s15, 384, %s1613_s6, [#allocation10]  }
 0x12a   :  { %s1151_s6 = smov [#allocation8]  }
 0x12b   :  { %s740_s26 = sshll.u32 %s1151_s6, 4  ;;  %s741_s26 = int_to_ptr.vmem [resolvable:$true] %s740_s26 }
 0x12c   :  { %s1108_s27 = scalar_lea.vmem %s741_s26, 256  ;;  %p1113_p5 = scmp.lt.s32.totalorder %s741_s26, %s741_s26 }
 0x12d   :  { %p1109_p4 = scmp.ne.s32.totalorder %s741_s26, %s1108_s27  ;;  %p1114_p6 = scmp.lt.s32.totalorder %s1108_s27, %s1108_s27 }
 0x12f   :  { %p1115_p7 = por %p1114_p6, %p1113_p5 }
 0x131   :  { %p1116_p8 = pnand %p1115_p7, %p1109_p4 }
 0x1b2   :  { %v829_v1 = vpop.f32.mrb[0].mxu0 }
 0x1b3   :  { %v830_v16 = vpop.f32.mrb[1].mxu0 }
 0x1b4   :  { %v831_v25 = vadd.f32 %v830_v16, %v829_v1  ;;  %v832_v31 = vpop.f32.mrb[2].mxu0 }
 0x1b5   :  { %v833_v32 = vpop.f32.mrb[3].mxu0 }
 0x1b6   :  { %v834_v35 = vadd.f32 %v833_v32, %v832_v31 }
 0x1d2   :  { %v860_v37 = vpop.f32.mrb[4].mxu0 }
 0x1d3   :  { %v861_v38 = vpop.f32.mrb[5].mxu0 }
 0x1d4   :  { %v862_v41 = vadd.f32 %v861_v38, %v860_v37  ;;  %v863_v42 = vpop.f32.mrb[6].mxu0 }
 0x1d5   :  { %v864_v43 = vpop.f32.mrb[7].mxu0 }
 0x1d6   :  { %v966_v44 = vadd.f32 %v862_v41, %v831_v25  ;;  %v865_v45 = vadd.f32 %v864_v43, %v863_v42 }
 0x1d8   :  { %v969_v46 = vadd.f32 %v865_v45, %v834_v35 }
 0x1f2   :  { %v891_v47 = vpop.f32.mrb[8].mxu0 }
 0x1f3   :  { %v892_v48 = vpop.f32.mrb[9].mxu0 }
 0x1f4   :  { %v724_v49 = vpop.f32.mrb[0].mxu1  ;;  %v893_v50 = vadd.f32 %v892_v48, %v891_v47  ;;  %v894_v51 = vpop.f32.mrb[10].mxu0 }
 0x1f5   :  { %v964_v52 = vpop.f32.mrb[1].mxu1  ;;  %v895_v53 = vpop.f32.mrb[11].mxu0 }
 0x1f6   :  { %v967_v54 = vadd.f32 %v966_v44, %v893_v50  ;;  %v727_v55 = vpop.f32.mrb[2].mxu1  ;;  %v896_v56 = vadd.f32 %v895_v53, %v894_v51 }
 0x1f7   :  { %v965_v57 = vpop.f32.mrb[3].mxu1 }
 0x1f8   :  { %v968_v6 = vadd.f32 %v967_v54, %v724_v49  ;;  %v970_v29 = vadd.f32 %v969_v46, %v896_v56 }
 0x1fa   :  { %733 = vst [vmem:[#allocation8] sm:$0xff] %v968_v6  ;;  %v971_v33 = vadd.f32 %v970_v29, %v727_v55 }
 0x1fc   :  { %734 = vst [vmem:[#allocation8 + $0x8] sm:$0xff] %v971_v33 }
 0x1fd   :  { %1119 = shalt.err (!%p1116_p8)
}
 0x1fe   :  { %s1120_s30 = scalar_lea.hbm %s1612_s5, 256 }
 0x1ff   :  { %p1121_p9 = scmp.ne.s32.totalorder %s1612_s5, %s1120_s30  ;;  %p1124_p10 = scmp.lt.u32.totalorder %s1120_s30, %s1612_s5 }
 0x201   :  { %p1126_p11 = pnand %p1124_p10, %p1121_p9 }
 0x203   :  { %1129 = shalt.err (!%p1126_p11)
}
 0x204   :  { %s1152_s9 = smov 128   ;;  %s1153_s10 = smov 8  }
 0x205   :  { %746 = dma.vmem_to_hbm [thread:$0]  %s741_s26, 256, %s1612_s5, [#allocation4], %s1152_s9, %s1152_s9, %s1153_s10  }
 0x206   :  { %1134 = dma.done.wait [#allocation4], 256  }
 0x207   :  { %1135 = vsyncadd [#allocation4], 4294967040 }
 0x208   :  { %1136 = dma.done.wait [#allocation10], 384  }
 0x209   :  { %1137 = vsyncadd [#allocation10], 4294966912 }
 0x20a   :  { %763 = vsyncpa [#allocation3], 1 }
 0x20b   :  { %764 = vsyncpa [#allocation6], 1 }
 0x20c   :  { %765 = vsyncpa [#allocation4], 1 }
 0x20d   :  { %766 = vsyncpa [#allocation10], 1 }

</bundles_post_ra>
